<compile_context>
chip_gen: v5e
topology: v5e:2x2
jax: 0.10.0
libtpu: 0.0.40
codegen_flags: <defaults>
</compile_context>

<pallas_src>
import jax
import jax.numpy as jnp
from jax.experimental import pallas as pl
from jax.experimental.pallas import tpu as pltpu


# ----------------------------------------------------------------------------
# Fused mapping-network kernel (both CustomMappingNetworks in one call).
# Emits the packed FiLM-affine tensor (10, B, H):
#   row 2i   = scale_i  = freq_i*15 + 30
#   row 2i+1 = bias_i   = scale_i * film_layer_bias_i + phase_i     (i = 0..3)
#   row 8/9  = color-layer scale / fused bias.
# ----------------------------------------------------------------------------
def _mapping_kernel(zs_ref, za_ref,
                    sw1, sb1, sw2, sb2, sw3, sb3, sw4, sb4,
                    aw1, ab1, aw2, ab2, aw3, ab3, aw4, ab4,
                    fbias_ref, film_ref):
    H = fbias_ref.shape[-1]

    def lrelu(t):
        return jnp.where(t >= 0, t, 0.2 * t)

    def dot(a, b):
        return jnp.dot(a, b, preferred_element_type=jnp.float32)

    def mlp(z, w1, b1, w2, b2, w3, b3, w4, b4):
        t = lrelu(dot(z, w1[...]) + b1[...])
        t = lrelu(dot(t, w2[...]) + b2[...])
        t = lrelu(dot(t, w3[...]) + b3[...])
        return dot(t, w4[...]) + b4[...]

    out_s = mlp(zs_ref[...], sw1, sb1, sw2, sb2, sw3, sb3, sw4, sb4)  # (B, 8H)
    out_a = mlp(za_ref[...], aw1, ab1, aw2, ab2, aw3, ab3, aw4, ab4)  # (B, 2H)
    fbias = fbias_ref[...]                                            # (5, H)

    for i in range(4):
        scale = out_s[:, i * H:(i + 1) * H] * 15.0 + 30.0
        phase = out_s[:, (4 + i) * H:(5 + i) * H]
        film_ref[2 * i] = scale
        film_ref[2 * i + 1] = scale * fbias[i:i + 1, :] + phase
    scale_c = out_a[:, :H] * 15.0 + 30.0
    film_ref[8] = scale_c
    film_ref[9] = scale_c * fbias[4:5, :] + out_a[:, H:]


def mapping_forward(z_shape, z_app, params):
    """Returns the packed FiLM-affine tensor of shape (10, B, H)."""
    B = z_shape.shape[0]
    H = params["hidden_dim"]
    ms, ma = params["map_shape"], params["map_app"]
    # FiLM-layer biases to fold: nb0..nb3 and the color layer's csb.
    fbias = jnp.concatenate([params["nb0"], params["nb1"], params["nb2"],
                             params["nb3"], params["csb"]], axis=0)   # (5, H)
    args = (z_shape, z_app,
            ms["w1"], ms["b1"], ms["w2"], ms["b2"],
            ms["w3"], ms["b3"], ms["w4"], ms["b4"],
            ma["w1"], ma["b1"], ma["w2"], ma["b2"],
            ma["w3"], ma["b3"], ma["w4"], ma["b4"],
            fbias)
    return pl.pallas_call(
        _mapping_kernel,
        out_shape=jax.ShapeDtypeStruct((10, B, H), jnp.float32),
    )(*args)


# ----------------------------------------------------------------------------
# Main per-point SIREN kernel (lane-dense: features on sublanes, points on
# lanes; all weights pre-transposed so the kernel computes W^T @ h).
# ----------------------------------------------------------------------------
def _siren_kernel(x_ref, ray_ref, film_ref, wslab_ref, nw0t_ref, cswrt_ref,
                  tbias_ref, headw_ref, headb_ref, out_ref):
    def dot(a, b):
        return jnp.dot(a, b, preferred_element_type=jnp.float32)

    x = x_ref[0]          # (in_dim, TN)
    ray = ray_ref[0]      # (3, TN)
    film = film_ref[0]    # (H, 10): col 2i = scale_i, col 2i+1 = fused bias_i
                          #          (i=0..3); col 8/9 = color scale / bias.

    # FiLM layer 0: sin(scale * (W0 x) + fused_bias)       -- bias pre-folded.
    h = jnp.sin(film[:, 0:1] * dot(nw0t_ref[...], x) + film[:, 1:2])

    # FiLM layers 1..3 (W^T rows 0..2 of the weight slab).
    for i in range(1, 4):
        pre = dot(wslab_ref[i - 1], h)
        h = jnp.sin(film[:, 2 * i:2 * i + 1] * pre
                    + film[:, 2 * i + 1:2 * i + 2])

    # 4 transform layers: sin(W h + b)  (W^T rows 3..6).
    for i in range(4):
        h = jnp.sin(dot(wslab_ref[3 + i], h) + tbias_ref[:, i:i + 1])

    # Color FiLM on cat([ray, h]) as a split matmul; csb folded into film[:,9].
    pre_c = dot(wslab_ref[7], h) + dot(cswrt_ref[...], ray)
    rgb = jnp.sin(film[:, 8:9] * pre_c + film[:, 9:10])

    # Fused head: rows 0..2 = clw^T @ rgb + clb, row 3 = fw^T @ h + fb.
    # Single dense (4, TN) store (lane-dense, no masked vst).
    out_ref[0] = dot(headw_ref[0], rgb) + dot(headw_ref[1], h) + headb_ref[...]


def tallsiren_forward(params, x, ray_directions, z_app, z_shape, *, tn=2048):
    B, N, in_dim = x.shape
    H = params["hidden_dim"]
    tn = min(tn, N)
    # Keep >= 2 parallel grid steps so v7x's second TensorCore isn't idle.
    while B * (N // tn) < 2 and tn % 256 == 0:
        tn //= 2
    assert N % tn == 0 and (tn == N or tn % 128 == 0), (N, tn)

    # Mapping networks -> fused per-batch FiLM affine, (B, H, 10) so each
    # column broadcasts across the point (lane) axis in the hot kernel.
    film = jnp.transpose(mapping_forward(z_shape, z_app, params), (1, 2, 0))

    # Lane-dense inputs: points on lanes, features on sublanes.
    x_t = jnp.swapaxes(x, 1, 2)                    # (B, in_dim, N)
    ray_t = jnp.swapaxes(ray_directions, 1, 2)     # (B, 3, N)

    # Packed, transposed weights.
    wslab = jnp.stack(
        [params["nw1"].T, params["nw2"].T, params["nw3"].T,
         params["tw0"].T, params["tw1"].T, params["tw2"].T, params["tw3"].T,
         params["csw_h"].T], axis=0)                                   # (8,H,H)
    nw0t = params["nw0"].T                                             # (H,in_dim)
    cswrt = params["csw_r"].T                                          # (H,3)
    tbias = jnp.concatenate([params["tb0"].T, params["tb1"].T,
                             params["tb2"].T, params["tb3"].T], axis=1)  # (H,4)
    headw = jnp.stack(
        [jnp.concatenate([params["clw"].T, jnp.zeros((1, H), jnp.float32)], axis=0),
         jnp.concatenate([jnp.zeros((3, H), jnp.float32), params["fw"].T], axis=0)],
        axis=0)                                                        # (2,4,H)
    headb = jnp.concatenate([params["clb"], params["fb"]], axis=1).T   # (4,1)

    grid = (B, N // tn)
    in_specs = [
        pl.BlockSpec((1, in_dim, tn), lambda b, n: (b, 0, n)),
        pl.BlockSpec((1, 3, tn), lambda b, n: (b, 0, n)),
        pl.BlockSpec((1, H, 10), lambda b, n: (b, 0, 0)),
        pl.BlockSpec((8, H, H), lambda b, n: (0, 0, 0)),
        pl.BlockSpec((H, in_dim), lambda b, n: (0, 0)),
        pl.BlockSpec((H, 3), lambda b, n: (0, 0)),
        pl.BlockSpec((H, 4), lambda b, n: (0, 0)),
        pl.BlockSpec((2, 4, H), lambda b, n: (0, 0, 0)),
        pl.BlockSpec((4, 1), lambda b, n: (0, 0)),
    ]
    out_t = pl.pallas_call(
        _siren_kernel,
        out_shape=jax.ShapeDtypeStruct((B, 4, N), jnp.float32),
        grid=grid,
        in_specs=in_specs,
        out_specs=pl.BlockSpec((1, 4, tn), lambda b, n: (b, 0, n)),
        compiler_params=pltpu.CompilerParams(
            dimension_semantics=("parallel", "parallel")),
    )(x_t, ray_t, film, wslab, nw0t, cswrt, tbias, headw, headb)

    # Back to the module's (B, N, 4) = concat([rgb, sigma], -1) layout.
    return jnp.swapaxes(out_t, 1, 2)


# ----------------------------------------------------------------------------
# Deterministic parameter initialization (mirrors the PyTorch init schemes)
# ----------------------------------------------------------------------------
def init_params(key, *, input_dim=2, hidden_dim=32, z_app_dim=16, z_shape_dim=16,
                map_hidden=64):
    H = hidden_dim
    keys = iter(jax.random.split(key, 64))
    p = {"hidden_dim": H}

    def siren_linear(fan_in, fan_out, first=False, freq=25.0):
        kw, kb = jax.random.split(next(keys))
        wb = (1.0 / fan_in) if first else ((6.0 / fan_in) ** 0.5 / freq)
        w = jax.random.uniform(kw, (fan_in, fan_out), jnp.float32, -wb, wb)
        bb = 1.0 / (fan_in ** 0.5)     # torch Linear default bias init
        b = jax.random.uniform(kb, (1, fan_out), jnp.float32, -bb, bb)
        return w, b

    # FiLM network (first layer gets film-sine init)
    for i, d in enumerate([input_dim, H, H, H]):
        p[f"nw{i}"], p[f"nb{i}"] = siren_linear(d, H, first=(i == 0))
    # transform network
    for i in range(4):
        p[f"tw{i}"], p[f"tb{i}"] = siren_linear(H, H)
    # final (sigma) layer
    p["fw"], p["fb"] = siren_linear(H, 1)
    # color FiLM layer, input = ray(3) + hidden(H); stored split for the kernel
    csw, p["csb"] = siren_linear(H + 3, H)
    p["csw_r"], p["csw_h"] = csw[:3, :], csw[3:, :]
    # color linear layer
    p["clw"], p["clb"] = siren_linear(H, 3)

    def mapping(z_dim, out_dim):
        mp = {}
        gain = (2.0 / (1.0 + 0.2 ** 2)) ** 0.5   # kaiming w/ leaky_relu a=0.2
        dims_in = [z_dim, map_hidden, map_hidden, map_hidden]
        dims_out = [map_hidden, map_hidden, map_hidden, out_dim]
        for i, (di, do) in enumerate(zip(dims_in, dims_out), start=1):
            kw, kb = jax.random.split(next(keys))
            w = jax.random.normal(kw, (di, do), jnp.float32) * (gain / (di ** 0.5))
            if i == 4:
                w = w * 0.25
            bb = 1.0 / (di ** 0.5)
            b = jax.random.uniform(kb, (1, do), jnp.float32, -bb, bb)
            mp[f"w{i}"], mp[f"b{i}"] = w, b
        return mp

    p["map_shape"] = mapping(z_shape_dim, 4 * H * 2)
    p["map_app"] = mapping(z_app_dim, H * 2)
    return p


# ----------------------------------------------------------------------------
# Pure-JAX reference (matches the PyTorch forward semantics)
# ----------------------------------------------------------------------------
def reference_forward(params, x, ray, z_app, z_shape):
    hp = jax.lax.Precision.HIGHEST
    dot = lambda a, b: jnp.dot(a, b, precision=hp)

    def mapping_ref(z, mp):
        h = z
        for i in (1, 2, 3):
            h = dot(h, mp[f"w{i}"]) + mp[f"b{i}"]
            h = jnp.where(h >= 0, h, 0.2 * h)
        out = dot(h, mp["w4"]) + mp["b4"]
        d = out.shape[-1]
        return out[:, : d // 2], out[:, d // 2:]

    H = params["hidden_dim"]
    fs, ps = mapping_ref(z_shape, params["map_shape"])
    fa, pa = mapping_ref(z_app, params["map_app"])
    fs = (fs * 15.0 + 30.0)[:, None, :]
    ps = ps[:, None, :]
    fa = (fa * 15.0 + 30.0)[:, None, :]
    pa = pa[:, None, :]

    h = x
    for i in range(4):
        pre = dot(h, params[f"nw{i}"]) + params[f"nb{i}"]
        h = jnp.sin(fs[..., i * H:(i + 1) * H] * pre + ps[..., i * H:(i + 1) * H])
    for i in range(4):
        h = jnp.sin(dot(h, params[f"tw{i}"]) + params[f"tb{i}"])
    sigma = dot(h, params["fw"]) + params["fb"]

    csw = jnp.concatenate([params["csw_r"], params["csw_h"]], axis=0)
    cin = jnp.concatenate([ray, h], axis=-1)
    rgb = jnp.sin(fa * (dot(cin, csw) + params["csb"]) + pa)
    rgb = dot(rgb, params["clw"]) + params["clb"]
    return jnp.concatenate([rgb, sigma], axis=-1)


# ----------------------------------------------------------------------------
if __name__ == "__main__":
    key = jax.random.PRNGKey(0)
    pkey, xkey, rkey, akey, skey = jax.random.split(key, 5)

    B, N, IN_DIM, HIDDEN, Z_APP, Z_SHAPE = 2, 2048, 2, 32, 16, 16
    params = init_params(pkey, input_dim=IN_DIM, hidden_dim=HIDDEN,
                         z_app_dim=Z_APP, z_shape_dim=Z_SHAPE, map_hidden=64)

    x = jax.random.normal(xkey, (B, N, IN_DIM), jnp.float32)
    ray = jax.random.normal(rkey, (B, N, 3), jnp.float32)
    ray = ray / jnp.linalg.norm(ray, axis=-1, keepdims=True)
    z_app = jax.random.normal(akey, (B, Z_APP), jnp.float32)
    z_shape = jax.random.normal(skey, (B, Z_SHAPE), jnp.float32)

    out = tallsiren_forward(params, x, ray, z_app, z_shape, tn=2048)
    out = jax.block_until_ready(out)

    ref = reference_forward(params, x, ray, z_app, z_shape)
    assert out.shape == (B, N, 4), out.shape
    err = float(jnp.max(jnp.abs(out - ref)))
    assert err < 5e-2, f"max abs error vs reference: {err}"
    print("KERNEL_OK")
</pallas_src>

<mosaic_0001>
module attributes {stable_mosaic.version = 11 : i64} {
  func.func @_mapping_kernel(%arg0: memref<2x16xf32, #tpu.memory_space<vmem>>, %arg1: memref<2x16xf32, #tpu.memory_space<vmem>>, %arg2: memref<16x64xf32, #tpu.memory_space<vmem>>, %arg3: memref<1x64xf32, #tpu.memory_space<vmem>>, %arg4: memref<64x64xf32, #tpu.memory_space<vmem>>, %arg5: memref<1x64xf32, #tpu.memory_space<vmem>>, %arg6: memref<64x64xf32, #tpu.memory_space<vmem>>, %arg7: memref<1x64xf32, #tpu.memory_space<vmem>>, %arg8: memref<64x256xf32, #tpu.memory_space<vmem>>, %arg9: memref<1x256xf32, #tpu.memory_space<vmem>>, %arg10: memref<16x64xf32, #tpu.memory_space<vmem>>, %arg11: memref<1x64xf32, #tpu.memory_space<vmem>>, %arg12: memref<64x64xf32, #tpu.memory_space<vmem>>, %arg13: memref<1x64xf32, #tpu.memory_space<vmem>>, %arg14: memref<64x64xf32, #tpu.memory_space<vmem>>, %arg15: memref<1x64xf32, #tpu.memory_space<vmem>>, %arg16: memref<64x64xf32, #tpu.memory_space<vmem>>, %arg17: memref<1x64xf32, #tpu.memory_space<vmem>>, %arg18: memref<5x32xf32, #tpu.memory_space<vmem>>, %arg19: memref<10x2x32xf32, #tpu.memory_space<vmem>>) attributes {dimension_semantics = [], scalar_prefetch = 0 : i64, scratch_operands = 0 : i64, tpu.core_type = #tpu.core_type<tc>} {
    %c0 = arith.constant 0 : index
    %c0_0 = arith.constant 0 : index
    %0 = vector.load %arg0[%c0, %c0_0] : memref<2x16xf32, #tpu.memory_space<vmem>>, vector<2x16xf32>
    %c0_1 = arith.constant 0 : index
    %c0_2 = arith.constant 0 : index
    %1 = vector.load %arg2[%c0_1, %c0_2] : memref<16x64xf32, #tpu.memory_space<vmem>>, vector<16x64xf32>
    %cst = arith.constant dense<0.000000e+00> : vector<2x64xf32>
    %2 = tpu.matmul %0, %1, %cst {dimension_numbers = #tpu.dot_dimension_numbers<[1], [0], [0], [1], [0, 0, 1, 1], [], []>} : vector<2x16xf32>, vector<16x64xf32>, vector<2x64xf32> -> vector<2x64xf32>
    %c0_3 = arith.constant 0 : index
    %c0_4 = arith.constant 0 : index
    %3 = vector.load %arg3[%c0_3, %c0_4] : memref<1x64xf32, #tpu.memory_space<vmem>>, vector<1x64xf32>
    %4 = vector.broadcast %3 : vector<1x64xf32> to vector<2x64xf32>
    %5 = arith.addf %2, %4 : vector<2x64xf32>
    %cst_5 = arith.constant 0.000000e+00 : f32
    %6 = vector.broadcast %cst_5 : f32 to vector<2x64xf32>
    %7 = arith.cmpf oge, %5, %6 : vector<2x64xf32>
    %cst_6 = arith.constant 2.000000e-01 : f32
    %8 = vector.broadcast %cst_6 : f32 to vector<2x64xf32>
    %9 = arith.mulf %8, %5 : vector<2x64xf32>
    %10 = arith.select %7, %5, %9 : vector<2x64xi1>, vector<2x64xf32>
    %c0_7 = arith.constant 0 : index
    %c0_8 = arith.constant 0 : index
    %11 = vector.load %arg4[%c0_7, %c0_8] : memref<64x64xf32, #tpu.memory_space<vmem>>, vector<64x64xf32>
    %cst_9 = arith.constant dense<0.000000e+00> : vector<2x64xf32>
    %12 = tpu.matmul %10, %11, %cst_9 {dimension_numbers = #tpu.dot_dimension_numbers<[1], [0], [0], [1], [0, 0, 1, 1], [], []>} : vector<2x64xf32>, vector<64x64xf32>, vector<2x64xf32> -> vector<2x64xf32>
    %c0_10 = arith.constant 0 : index
    %c0_11 = arith.constant 0 : index
    %13 = vector.load %arg5[%c0_10, %c0_11] : memref<1x64xf32, #tpu.memory_space<vmem>>, vector<1x64xf32>
    %14 = vector.broadcast %13 : vector<1x64xf32> to vector<2x64xf32>
    %15 = arith.addf %12, %14 : vector<2x64xf32>
    %cst_12 = arith.constant 0.000000e+00 : f32
    %16 = vector.broadcast %cst_12 : f32 to vector<2x64xf32>
    %17 = arith.cmpf oge, %15, %16 : vector<2x64xf32>
    %cst_13 = arith.constant 2.000000e-01 : f32
    %18 = vector.broadcast %cst_13 : f32 to vector<2x64xf32>
    %19 = arith.mulf %18, %15 : vector<2x64xf32>
    %20 = arith.select %17, %15, %19 : vector<2x64xi1>, vector<2x64xf32>
    %c0_14 = arith.constant 0 : index
    %c0_15 = arith.constant 0 : index
    %21 = vector.load %arg6[%c0_14, %c0_15] : memref<64x64xf32, #tpu.memory_space<vmem>>, vector<64x64xf32>
    %cst_16 = arith.constant dense<0.000000e+00> : vector<2x64xf32>
    %22 = tpu.matmul %20, %21, %cst_16 {dimension_numbers = #tpu.dot_dimension_numbers<[1], [0], [0], [1], [0, 0, 1, 1], [], []>} : vector<2x64xf32>, vector<64x64xf32>, vector<2x64xf32> -> vector<2x64xf32>
    %c0_17 = arith.constant 0 : index
    %c0_18 = arith.constant 0 : index
    %23 = vector.load %arg7[%c0_17, %c0_18] : memref<1x64xf32, #tpu.memory_space<vmem>>, vector<1x64xf32>
    %24 = vector.broadcast %23 : vector<1x64xf32> to vector<2x64xf32>
    %25 = arith.addf %22, %24 : vector<2x64xf32>
    %cst_19 = arith.constant 0.000000e+00 : f32
    %26 = vector.broadcast %cst_19 : f32 to vector<2x64xf32>
    %27 = arith.cmpf oge, %25, %26 : vector<2x64xf32>
    %cst_20 = arith.constant 2.000000e-01 : f32
    %28 = vector.broadcast %cst_20 : f32 to vector<2x64xf32>
    %29 = arith.mulf %28, %25 : vector<2x64xf32>
    %30 = arith.select %27, %25, %29 : vector<2x64xi1>, vector<2x64xf32>
    %c0_21 = arith.constant 0 : index
    %c0_22 = arith.constant 0 : index
    %31 = vector.load %arg8[%c0_21, %c0_22] : memref<64x256xf32, #tpu.memory_space<vmem>>, vector<64x256xf32>
    %cst_23 = arith.constant dense<0.000000e+00> : vector<2x256xf32>
    %32 = tpu.matmul %30, %31, %cst_23 {dimension_numbers = #tpu.dot_dimension_numbers<[1], [0], [0], [1], [0, 0, 1, 1], [], []>} : vector<2x64xf32>, vector<64x256xf32>, vector<2x256xf32> -> vector<2x256xf32>
    %c0_24 = arith.constant 0 : index
    %c0_25 = arith.constant 0 : index
    %33 = vector.load %arg9[%c0_24, %c0_25] : memref<1x256xf32, #tpu.memory_space<vmem>>, vector<1x256xf32>
    %34 = vector.broadcast %33 : vector<1x256xf32> to vector<2x256xf32>
    %35 = arith.addf %32, %34 : vector<2x256xf32>
    %c0_26 = arith.constant 0 : index
    %c0_27 = arith.constant 0 : index
    %36 = vector.load %arg1[%c0_26, %c0_27] : memref<2x16xf32, #tpu.memory_space<vmem>>, vector<2x16xf32>
    %c0_28 = arith.constant 0 : index
    %c0_29 = arith.constant 0 : index
    %37 = vector.load %arg10[%c0_28, %c0_29] : memref<16x64xf32, #tpu.memory_space<vmem>>, vector<16x64xf32>
    %cst_30 = arith.constant dense<0.000000e+00> : vector<2x64xf32>
    %38 = tpu.matmul %36, %37, %cst_30 {dimension_numbers = #tpu.dot_dimension_numbers<[1], [0], [0], [1], [0, 0, 1, 1], [], []>} : vector<2x16xf32>, vector<16x64xf32>, vector<2x64xf32> -> vector<2x64xf32>
    %c0_31 = arith.constant 0 : index
    %c0_32 = arith.constant 0 : index
    %39 = vector.load %arg11[%c0_31, %c0_32] : memref<1x64xf32, #tpu.memory_space<vmem>>, vector<1x64xf32>
    %40 = vector.broadcast %39 : vector<1x64xf32> to vector<2x64xf32>
    %41 = arith.addf %38, %40 : vector<2x64xf32>
    %cst_33 = arith.constant 0.000000e+00 : f32
    %42 = vector.broadcast %cst_33 : f32 to vector<2x64xf32>
    %43 = arith.cmpf oge, %41, %42 : vector<2x64xf32>
    %cst_34 = arith.constant 2.000000e-01 : f32
    %44 = vector.broadcast %cst_34 : f32 to vector<2x64xf32>
    %45 = arith.mulf %44, %41 : vector<2x64xf32>
    %46 = arith.select %43, %41, %45 : vector<2x64xi1>, vector<2x64xf32>
    %c0_35 = arith.constant 0 : index
    %c0_36 = arith.constant 0 : index
    %47 = vector.load %arg12[%c0_35, %c0_36] : memref<64x64xf32, #tpu.memory_space<vmem>>, vector<64x64xf32>
    %cst_37 = arith.constant dense<0.000000e+00> : vector<2x64xf32>
    %48 = tpu.matmul %46, %47, %cst_37 {dimension_numbers = #tpu.dot_dimension_numbers<[1], [0], [0], [1], [0, 0, 1, 1], [], []>} : vector<2x64xf32>, vector<64x64xf32>, vector<2x64xf32> -> vector<2x64xf32>
    %c0_38 = arith.constant 0 : index
    %c0_39 = arith.constant 0 : index
    %49 = vector.load %arg13[%c0_38, %c0_39] : memref<1x64xf32, #tpu.memory_space<vmem>>, vector<1x64xf32>
    %50 = vector.broadcast %49 : vector<1x64xf32> to vector<2x64xf32>
    %51 = arith.addf %48, %50 : vector<2x64xf32>
    %cst_40 = arith.constant 0.000000e+00 : f32
    %52 = vector.broadcast %cst_40 : f32 to vector<2x64xf32>
    %53 = arith.cmpf oge, %51, %52 : vector<2x64xf32>
    %cst_41 = arith.constant 2.000000e-01 : f32
    %54 = vector.broadcast %cst_41 : f32 to vector<2x64xf32>
    %55 = arith.mulf %54, %51 : vector<2x64xf32>
    %56 = arith.select %53, %51, %55 : vector<2x64xi1>, vector<2x64xf32>
    %c0_42 = arith.constant 0 : index
    %c0_43 = arith.constant 0 : index
    %57 = vector.load %arg14[%c0_42, %c0_43] : memref<64x64xf32, #tpu.memory_space<vmem>>, vector<64x64xf32>
    %cst_44 = arith.constant dense<0.000000e+00> : vector<2x64xf32>
    %58 = tpu.matmul %56, %57, %cst_44 {dimension_numbers = #tpu.dot_dimension_numbers<[1], [0], [0], [1], [0, 0, 1, 1], [], []>} : vector<2x64xf32>, vector<64x64xf32>, vector<2x64xf32> -> vector<2x64xf32>
    %c0_45 = arith.constant 0 : index
    %c0_46 = arith.constant 0 : index
    %59 = vector.load %arg15[%c0_45, %c0_46] : memref<1x64xf32, #tpu.memory_space<vmem>>, vector<1x64xf32>
    %60 = vector.broadcast %59 : vector<1x64xf32> to vector<2x64xf32>
    %61 = arith.addf %58, %60 : vector<2x64xf32>
    %cst_47 = arith.constant 0.000000e+00 : f32
    %62 = vector.broadcast %cst_47 : f32 to vector<2x64xf32>
    %63 = arith.cmpf oge, %61, %62 : vector<2x64xf32>
    %cst_48 = arith.constant 2.000000e-01 : f32
    %64 = vector.broadcast %cst_48 : f32 to vector<2x64xf32>
    %65 = arith.mulf %64, %61 : vector<2x64xf32>
    %66 = arith.select %63, %61, %65 : vector<2x64xi1>, vector<2x64xf32>
    %c0_49 = arith.constant 0 : index
    %c0_50 = arith.constant 0 : index
    %67 = vector.load %arg16[%c0_49, %c0_50] : memref<64x64xf32, #tpu.memory_space<vmem>>, vector<64x64xf32>
    %cst_51 = arith.constant dense<0.000000e+00> : vector<2x64xf32>
    %68 = tpu.matmul %66, %67, %cst_51 {dimension_numbers = #tpu.dot_dimension_numbers<[1], [0], [0], [1], [0, 0, 1, 1], [], []>} : vector<2x64xf32>, vector<64x64xf32>, vector<2x64xf32> -> vector<2x64xf32>
    %c0_52 = arith.constant 0 : index
    %c0_53 = arith.constant 0 : index
    %69 = vector.load %arg17[%c0_52, %c0_53] : memref<1x64xf32, #tpu.memory_space<vmem>>, vector<1x64xf32>
    %70 = vector.broadcast %69 : vector<1x64xf32> to vector<2x64xf32>
    %71 = arith.addf %68, %70 : vector<2x64xf32>
    %c0_54 = arith.constant 0 : index
    %c0_55 = arith.constant 0 : index
    %72 = vector.load %arg18[%c0_54, %c0_55] : memref<5x32xf32, #tpu.memory_space<vmem>>, vector<5x32xf32>
    %73 = vector.extract_strided_slice %35 {offsets = [0, 0], sizes = [2, 32], strides = [1, 1]} : vector<2x256xf32> to vector<2x32xf32>
    %cst_56 = arith.constant 1.500000e+01 : f32
    %74 = vector.broadcast %cst_56 : f32 to vector<2x32xf32>
    %75 = arith.mulf %73, %74 : vector<2x32xf32>
    %cst_57 = arith.constant 3.000000e+01 : f32
    %76 = vector.broadcast %cst_57 : f32 to vector<2x32xf32>
    %77 = arith.addf %75, %76 : vector<2x32xf32>
    %78 = vector.extract_strided_slice %35 {offsets = [0, 128], sizes = [2, 32], strides = [1, 1]} : vector<2x256xf32> to vector<2x32xf32>
    %c0_58 = arith.constant 0 : index
    %c0_59 = arith.constant 0 : index
    %c0_60 = arith.constant 0 : index
    %79 = vector.load %arg19[%c0_58, %c0_59, %c0_60] : memref<10x2x32xf32, #tpu.memory_space<vmem>>, vector<1x2x32xf32>
    %80 = vector.shape_cast %79 : vector<1x2x32xf32> to vector<2x32xf32>
    %81 = vector.shape_cast %77 : vector<2x32xf32> to vector<1x2x32xf32>
    tpu.vector_store %arg19[%c0_58, %c0_59, %c0_60], %81 {strides = array<i32>} : memref<10x2x32xf32, #tpu.memory_space<vmem>>, vector<1x2x32xf32>,
    %82 = vector.extract_strided_slice %72 {offsets = [0, 0], sizes = [1, 32], strides = [1, 1]} : vector<5x32xf32> to vector<1x32xf32>
    %83 = vector.broadcast %82 : vector<1x32xf32> to vector<2x32xf32>
    %84 = arith.mulf %77, %83 : vector<2x32xf32>
    %85 = arith.addf %84, %78 : vector<2x32xf32>
    %c1 = arith.constant 1 : index
    %c0_61 = arith.constant 0 : index
    %c0_62 = arith.constant 0 : index
    %86 = vector.load %arg19[%c1, %c0_61, %c0_62] : memref<10x2x32xf32, #tpu.memory_space<vmem>>, vector<1x2x32xf32>
    %87 = vector.shape_cast %86 : vector<1x2x32xf32> to vector<2x32xf32>
    %88 = vector.shape_cast %85 : vector<2x32xf32> to vector<1x2x32xf32>
    tpu.vector_store %arg19[%c1, %c0_61, %c0_62], %88 {strides = array<i32>} : memref<10x2x32xf32, #tpu.memory_space<vmem>>, vector<1x2x32xf32>,
    %89 = vector.extract_strided_slice %35 {offsets = [0, 32], sizes = [2, 32], strides = [1, 1]} : vector<2x256xf32> to vector<2x32xf32>
    %cst_63 = arith.constant 1.500000e+01 : f32
    %90 = vector.broadcast %cst_63 : f32 to vector<2x32xf32>
    %91 = arith.mulf %89, %90 : vector<2x32xf32>
    %cst_64 = arith.constant 3.000000e+01 : f32
    %92 = vector.broadcast %cst_64 : f32 to vector<2x32xf32>
    %93 = arith.addf %91, %92 : vector<2x32xf32>
    %94 = vector.extract_strided_slice %35 {offsets = [0, 160], sizes = [2, 32], strides = [1, 1]} : vector<2x256xf32> to vector<2x32xf32>
    %c2 = arith.constant 2 : index
    %c0_65 = arith.constant 0 : index
    %c0_66 = arith.constant 0 : index
    %95 = vector.load %arg19[%c2, %c0_65, %c0_66] : memref<10x2x32xf32, #tpu.memory_space<vmem>>, vector<1x2x32xf32>
    %96 = vector.shape_cast %95 : vector<1x2x32xf32> to vector<2x32xf32>
    %97 = vector.shape_cast %93 : vector<2x32xf32> to vector<1x2x32xf32>
    tpu.vector_store %arg19[%c2, %c0_65, %c0_66], %97 {strides = array<i32>} : memref<10x2x32xf32, #tpu.memory_space<vmem>>, vector<1x2x32xf32>,
    %98 = vector.extract_strided_slice %72 {offsets = [1, 0], sizes = [1, 32], strides = [1, 1]} : vector<5x32xf32> to vector<1x32xf32>
    %99 = vector.broadcast %98 : vector<1x32xf32> to vector<2x32xf32>
    %100 = arith.mulf %93, %99 : vector<2x32xf32>
    %101 = arith.addf %100, %94 : vector<2x32xf32>
    %c3 = arith.constant 3 : index
    %c0_67 = arith.constant 0 : index
    %c0_68 = arith.constant 0 : index
    %102 = vector.load %arg19[%c3, %c0_67, %c0_68] : memref<10x2x32xf32, #tpu.memory_space<vmem>>, vector<1x2x32xf32>
    %103 = vector.shape_cast %102 : vector<1x2x32xf32> to vector<2x32xf32>
    %104 = vector.shape_cast %101 : vector<2x32xf32> to vector<1x2x32xf32>
    tpu.vector_store %arg19[%c3, %c0_67, %c0_68], %104 {strides = array<i32>} : memref<10x2x32xf32, #tpu.memory_space<vmem>>, vector<1x2x32xf32>,
    %105 = vector.extract_strided_slice %35 {offsets = [0, 64], sizes = [2, 32], strides = [1, 1]} : vector<2x256xf32> to vector<2x32xf32>
    %cst_69 = arith.constant 1.500000e+01 : f32
    %106 = vector.broadcast %cst_69 : f32 to vector<2x32xf32>
    %107 = arith.mulf %105, %106 : vector<2x32xf32>
    %cst_70 = arith.constant 3.000000e+01 : f32
    %108 = vector.broadcast %cst_70 : f32 to vector<2x32xf32>
    %109 = arith.addf %107, %108 : vector<2x32xf32>
    %110 = vector.extract_strided_slice %35 {offsets = [0, 192], sizes = [2, 32], strides = [1, 1]} : vector<2x256xf32> to vector<2x32xf32>
    %c4 = arith.constant 4 : index
    %c0_71 = arith.constant 0 : index
    %c0_72 = arith.constant 0 : index
    %111 = vector.load %arg19[%c4, %c0_71, %c0_72] : memref<10x2x32xf32, #tpu.memory_space<vmem>>, vector<1x2x32xf32>
    %112 = vector.shape_cast %111 : vector<1x2x32xf32> to vector<2x32xf32>
    %113 = vector.shape_cast %109 : vector<2x32xf32> to vector<1x2x32xf32>
    tpu.vector_store %arg19[%c4, %c0_71, %c0_72], %113 {strides = array<i32>} : memref<10x2x32xf32, #tpu.memory_space<vmem>>, vector<1x2x32xf32>,
    %114 = vector.extract_strided_slice %72 {offsets = [2, 0], sizes = [1, 32], strides = [1, 1]} : vector<5x32xf32> to vector<1x32xf32>
    %115 = vector.broadcast %114 : vector<1x32xf32> to vector<2x32xf32>
    %116 = arith.mulf %109, %115 : vector<2x32xf32>
    %117 = arith.addf %116, %110 : vector<2x32xf32>
    %c5 = arith.constant 5 : index
    %c0_73 = arith.constant 0 : index
    %c0_74 = arith.constant 0 : index
    %118 = vector.load %arg19[%c5, %c0_73, %c0_74] : memref<10x2x32xf32, #tpu.memory_space<vmem>>, vector<1x2x32xf32>
    %119 = vector.shape_cast %118 : vector<1x2x32xf32> to vector<2x32xf32>
    %120 = vector.shape_cast %117 : vector<2x32xf32> to vector<1x2x32xf32>
    tpu.vector_store %arg19[%c5, %c0_73, %c0_74], %120 {strides = array<i32>} : memref<10x2x32xf32, #tpu.memory_space<vmem>>, vector<1x2x32xf32>,
    %121 = vector.extract_strided_slice %35 {offsets = [0, 96], sizes = [2, 32], strides = [1, 1]} : vector<2x256xf32> to vector<2x32xf32>
    %cst_75 = arith.constant 1.500000e+01 : f32
    %122 = vector.broadcast %cst_75 : f32 to vector<2x32xf32>
    %123 = arith.mulf %121, %122 : vector<2x32xf32>
    %cst_76 = arith.constant 3.000000e+01 : f32
    %124 = vector.broadcast %cst_76 : f32 to vector<2x32xf32>
    %125 = arith.addf %123, %124 : vector<2x32xf32>
    %126 = vector.extract_strided_slice %35 {offsets = [0, 224], sizes = [2, 32], strides = [1, 1]} : vector<2x256xf32> to vector<2x32xf32>
    %c6 = arith.constant 6 : index
    %c0_77 = arith.constant 0 : index
    %c0_78 = arith.constant 0 : index
    %127 = vector.load %arg19[%c6, %c0_77, %c0_78] : memref<10x2x32xf32, #tpu.memory_space<vmem>>, vector<1x2x32xf32>
    %128 = vector.shape_cast %127 : vector<1x2x32xf32> to vector<2x32xf32>
    %129 = vector.shape_cast %125 : vector<2x32xf32> to vector<1x2x32xf32>
    tpu.vector_store %arg19[%c6, %c0_77, %c0_78], %129 {strides = array<i32>} : memref<10x2x32xf32, #tpu.memory_space<vmem>>, vector<1x2x32xf32>,
    %130 = vector.extract_strided_slice %72 {offsets = [3, 0], sizes = [1, 32], strides = [1, 1]} : vector<5x32xf32> to vector<1x32xf32>
    %131 = vector.broadcast %130 : vector<1x32xf32> to vector<2x32xf32>
    %132 = arith.mulf %125, %131 : vector<2x32xf32>
    %133 = arith.addf %132, %126 : vector<2x32xf32>
    %c7 = arith.constant 7 : index
    %c0_79 = arith.constant 0 : index
    %c0_80 = arith.constant 0 : index
    %134 = vector.load %arg19[%c7, %c0_79, %c0_80] : memref<10x2x32xf32, #tpu.memory_space<vmem>>, vector<1x2x32xf32>
    %135 = vector.shape_cast %134 : vector<1x2x32xf32> to vector<2x32xf32>
    %136 = vector.shape_cast %133 : vector<2x32xf32> to vector<1x2x32xf32>
    tpu.vector_store %arg19[%c7, %c0_79, %c0_80], %136 {strides = array<i32>} : memref<10x2x32xf32, #tpu.memory_space<vmem>>, vector<1x2x32xf32>,
    %137 = vector.extract_strided_slice %71 {offsets = [0, 0], sizes = [2, 32], strides = [1, 1]} : vector<2x64xf32> to vector<2x32xf32>
    %cst_81 = arith.constant 1.500000e+01 : f32
    %138 = vector.broadcast %cst_81 : f32 to vector<2x32xf32>
    %139 = arith.mulf %137, %138 : vector<2x32xf32>
    %cst_82 = arith.constant 3.000000e+01 : f32
    %140 = vector.broadcast %cst_82 : f32 to vector<2x32xf32>
    %141 = arith.addf %139, %140 : vector<2x32xf32>
    %c8 = arith.constant 8 : index
    %c0_83 = arith.constant 0 : index
    %c0_84 = arith.constant 0 : index
    %142 = vector.load %arg19[%c8, %c0_83, %c0_84] : memref<10x2x32xf32, #tpu.memory_space<vmem>>, vector<1x2x32xf32>
    %143 = vector.shape_cast %142 : vector<1x2x32xf32> to vector<2x32xf32>
    %144 = vector.shape_cast %141 : vector<2x32xf32> to vector<1x2x32xf32>
    tpu.vector_store %arg19[%c8, %c0_83, %c0_84], %144 {strides = array<i32>} : memref<10x2x32xf32, #tpu.memory_space<vmem>>, vector<1x2x32xf32>,
    %145 = vector.extract_strided_slice %72 {offsets = [4, 0], sizes = [1, 32], strides = [1, 1]} : vector<5x32xf32> to vector<1x32xf32>
    %146 = vector.broadcast %145 : vector<1x32xf32> to vector<2x32xf32>
    %147 = arith.mulf %141, %146 : vector<2x32xf32>
    %148 = vector.extract_strided_slice %71 {offsets = [0, 32], sizes = [2, 32], strides = [1, 1]} : vector<2x64xf32> to vector<2x32xf32>
    %149 = arith.addf %147, %148 : vector<2x32xf32>
    %c9 = arith.constant 9 : index
    %c0_85 = arith.constant 0 : index
    %c0_86 = arith.constant 0 : index
    %150 = vector.load %arg19[%c9, %c0_85, %c0_86] : memref<10x2x32xf32, #tpu.memory_space<vmem>>, vector<1x2x32xf32>
    %151 = vector.shape_cast %150 : vector<1x2x32xf32> to vector<2x32xf32>
    %152 = vector.shape_cast %149 : vector<2x32xf32> to vector<1x2x32xf32>
    tpu.vector_store %arg19[%c9, %c0_85, %c0_86], %152 {strides = array<i32>} : memref<10x2x32xf32, #tpu.memory_space<vmem>>, vector<1x2x32xf32>,
    return
  }
}

</mosaic_0001>

<bundles_post_ra>
// kernel: tpu_custom_call.1
= control target key start
LH: loop header
LB: loop body
LE: loop exit
PB: predicated region body
PF: predicated region fallthrough
CT: control target
= control target key end

     0   :  { %s1227_s0 = inlined_call_operand.hbm [shape: f32[2,16], index: 0, kind: input, shape index: {}]   ;;  %s1228_s1 = inlined_call_operand.hbm [shape: f32[2,16], index: 1, kind: input, shape index: {}]   ;;  %s1229_s2 = inlined_call_operand.hbm [shape: f32[16,64], index: 2, kind: input, shape index: {}]   ;;  %s1230_s3 = inlined_call_operand.vmem [shape: f32[1,64], index: 3, kind: input, shape index: {}]   ;;  %s1231_s4 = inlined_call_operand.hbm [shape: f32[64,64], index: 4, kind: input, shape index: {}]   ;;  %s1232_s5 = inlined_call_operand.vmem [shape: f32[1,64], index: 5, kind: input, shape index: {}]   ;;  %s1233_s6 = inlined_call_operand.hbm [shape: f32[64,64], index: 6, kind: input, shape index: {}]   ;;  %s1234_s7 = inlined_call_operand.vmem [shape: f32[1,64], index: 7, kind: input, shape index: {}]   ;;  %s1235_s8 = inlined_call_operand.hbm [shape: f32[64,256], index: 8, kind: input, shape index: {}]   ;;  %s1236_s9 = inlined_call_operand.vmem [shape: f32[1,256], index: 9, kind: input, shape index: {}]   ;;  %s1237_s10 = inlined_call_operand.hbm [shape: f32[16,64], index: 10, kind: input, shape index: {}]   ;;  %s1238_s11 = inlined_call_operand.vmem [shape: f32[1,64], index: 11, kind: input, shape index: {}]   ;;  %s1239_s12 = inlined_call_operand.hbm [shape: f32[64,64], index: 12, kind: input, shape index: {}]   ;;  %s1240_s13 = inlined_call_operand.vmem [shape: f32[1,64], index: 13, kind: input, shape index: {}]   ;;  %s1241_s14 = inlined_call_operand.hbm [shape: f32[64,64], index: 14, kind: input, shape index: {}]   ;;  %s1242_s15 = inlined_call_operand.vmem [shape: f32[1,64], index: 15, kind: input, shape index: {}]   ;;  %s1243_s16 = inlined_call_operand.hbm [shape: f32[64,64], index: 16, kind: input, shape index: {}]   ;;  %s1244_s17 = inlined_call_operand.hbm [shape: f32[1,64], index: 17, kind: input, shape index: {}]   ;;  %s1245_s18 = inlined_call_operand.vmem [shape: f32[5,32], index: 18, kind: input, shape index: {}]   ;;  %s1246_s19 = inlined_call_operand.hbm [shape: f32[10,2,32], index: 19, kind: output, shape index: {}]  }
   0x1   :  { %1247 = sst [smem:[#allocation28_spill]] %s1227_s0 }
   0x2   :  { %1248 = sst [smem:[#allocation29_spill]] %s1228_s1 }
   0x3   :  { %1249 = sst [smem:[#allocation30_spill]] %s1229_s2 }
   0x4   :  { %1250 = sst [smem:[#allocation31_spill]] %s1230_s3 }
   0x5   :  { %24 = vsyncpa [#allocation3], 0 }
   0x6   :  { %25 = vsyncpa [#allocation6], 0 }
   0x7   :  { %26 = vsyncpa [#allocation9], 0 }
   0x8   :  { %27 = vsyncpa [#allocation12], 0 }
   0x9   :  { %28 = vsyncpa [#allocation15], 0 }
   0xa   :  { %29 = vsyncpa [#allocation18], 0  ;;  %s1251_s20 = sld [smem:[#allocation29_spill]] }
  0x10   :  { %s47_s21 = sshll.u32 %s1251_s20, 4  ;;  %s48_s21 = int_to_ptr.hbm [resolvable:$true] %s47_s21 }
  0x11   :  { %30 = vsyncpa [#allocation4], 0  ;;  %s988_s1 = smov [#allocation5]   ;;  %s72_s24 = sshll.u32 %s1231_s4, 4  ;;  %s73_s24 = int_to_ptr.hbm [resolvable:$true] %s72_s24 }
  0x12   :  { %s49_s22 = sshll.u32 %s988_s1, 4  ;;  %s989_s25 = smov [#allocation8]   ;;  %s50_s22 = int_to_ptr.vmem [resolvable:$true] %s49_s22 }
  0x13   :  { %52 = dma.hbm_to_vmem [thread:$0]  %s48_s21, 32, %s50_s22, [#allocation6]  }
  0x14   :  { %s74_s3 = sshll.u32 %s989_s25, 4  ;;  %s102_s28 = sshll.u32 %s1235_s8, 4  ;;  %s75_s3 = int_to_ptr.vmem [resolvable:$true] %s74_s3  ;;  %s103_s28 = int_to_ptr.hbm [resolvable:$true] %s102_s28 }
  0x15   :  { %s990_s29 = smov 128   ;;  %s991_s0 = smov 8  }
  0x16   :  { %80 = dma.hbm_to_vmem [thread:$0]  %s73_s24, 1024, %s75_s3, [#allocation9], %s990_s29, %s990_s29, %s991_s0  }
  0x17   :  { %s992_s30 = smov [#allocation11]   ;;  %s132_s1 = sshll.u32 %s1239_s12, 4  ;;  %s133_s1 = int_to_ptr.hbm [resolvable:$true] %s132_s1 }
  0x18   :  { %s104_s20 = sshll.u32 %s992_s30, 4  ;;  %s993_s22 = smov 256   ;;  %s105_s20 = int_to_ptr.vmem [resolvable:$true] %s104_s20 }
  0x19   :  { %s994_s2 = smov 16   ;;  %s995_s8 = smov [#allocation14]  }
  0x1a   :  { %110 = dma.hbm_to_vmem [thread:$0]  %s103_s28, 2048, %s105_s20, [#allocation12], %s993_s22, %s993_s22, %s994_s2  }
  0x1b   :  { %s134_s23 = sshll.u32 %s995_s8, 4  ;;  %s162_s27 = sshll.u32 %s1243_s16, 4  ;;  %s135_s23 = int_to_ptr.vmem [resolvable:$true] %s134_s23  ;;  %s163_s27 = int_to_ptr.hbm [resolvable:$true] %s162_s27 }
  0x1c   :  { %140 = dma.hbm_to_vmem [thread:$0]  %s133_s1, 1024, %s135_s23, [#allocation15], %s990_s29, %s990_s29, %s991_s0  }
  0x1d   :  { %s1252_s30 = sld [smem:[#allocation28_spill]]  ;;  %s996_s21 = smov [#allocation17]  }
  0x1e   :  { %s164_s4 = sshll.u32 %s996_s21, 4  ;;  %s997_s28 = smov [#allocation2]   ;;  %s165_s4 = int_to_ptr.vmem [resolvable:$true] %s164_s4 }
  0x1f   :  { %170 = dma.hbm_to_vmem [thread:$0]  %s163_s27, 1024, %s165_s4, [#allocation18], %s990_s29, %s990_s29, %s991_s0  }
  0x20   :  { %s38_s16 = sshll.u32 %s997_s28, 4  ;;  %s1253_s2 = sld [smem:[#allocation30_spill]]  ;;  %s39_s16 = int_to_ptr.vmem [resolvable:$true] %s38_s16 }
  0x21   :  { %s87_s25 = sshll.u32 %s1233_s6, 4  ;;  %s998_s26 = smov [#allocation7]   ;;  %s88_s25 = int_to_ptr.hbm [resolvable:$true] %s87_s25 }
  0x22   :  { %s59_s24 = sshll.u32 %s998_s26, 4  ;;  %s999_s27 = smov [#allocation10]   ;;  %s60_s24 = int_to_ptr.vmem [resolvable:$true] %s59_s24 }
  0x23   :  { %s36_s12 = sshll.u32 %s1252_s30, 4  ;;  %s89_s3 = sshll.u32 %s999_s27, 4  ;;  %s37_s12 = int_to_ptr.hbm [resolvable:$true] %s36_s12  ;;  %s90_s3 = int_to_ptr.vmem [resolvable:$true] %s89_s3 }
  0x24   :  { %41 = dma.hbm_to_vmem [thread:$0]  %s37_s12, 32, %s39_s16, [#allocation3]  }
  0x25   :  { %s117_s4 = sshll.u32 %s1237_s10, 4  ;;  %s147_s28 = sshll.u32 %s1241_s14, 4  ;;  %s118_s4 = int_to_ptr.hbm [resolvable:$true] %s117_s4  ;;  %s148_s28 = int_to_ptr.hbm [resolvable:$true] %s147_s28 }
  0x26   :  { %s57_s8 = sshll.u32 %s1253_s2, 4  ;;  %s1000_s16 = smov [#allocation13]   ;;  %s58_s8 = int_to_ptr.hbm [resolvable:$true] %s57_s8 }
  0x27   :  { %65 = dma.hbm_to_vmem [thread:$0]  %s58_s8, 256, %s60_s24, [#allocation6], %s990_s29, %s990_s29, %s991_s0  }
  0x28   :  { %95 = dma.hbm_to_vmem [thread:$0]  %s88_s25, 1024, %s90_s3, [#allocation9], %s990_s29, %s990_s29, %s991_s0  }
  0x29   :  { %s119_s20 = sshll.u32 %s1000_s16, 4  ;;  %s1001_s22 = smov [#allocation16]   ;;  %s120_s20 = int_to_ptr.vmem [resolvable:$true] %s119_s20 }
  0x2a   :  { %125 = dma.hbm_to_vmem [thread:$0]  %s118_s4, 256, %s120_s20, [#allocation12], %s990_s29, %s990_s29, %s991_s0  }
  0x2b   :  { %s149_s10 = sshll.u32 %s1001_s22, 4  ;;  %s176_s1 = sshll.u32 %s1244_s17, 4  ;;  %s150_s10 = int_to_ptr.vmem [resolvable:$true] %s149_s10  ;;  %s177_s1 = int_to_ptr.hbm [resolvable:$true] %s176_s1 }
  0x2c   :  { %155 = dma.hbm_to_vmem [thread:$0]  %s148_s28, 1024, %s150_s10, [#allocation15], %s990_s29, %s990_s29, %s991_s0  }
  0x2d   :  { %s1002_s14 = smov [#allocation19]  }
  0x2e   :  { %s178_s23 = sshll.u32 %s1002_s14, 4  ;;  %s179_s23 = int_to_ptr.vmem [resolvable:$true] %s178_s23 }
  0x2f   :  { %181 = dma.hbm_to_vmem [thread:$0]  %s177_s1, 16, %s179_s23, [#allocation18]  }
  0x30   :  { %974 = dma.done.wait [#allocation3], 32  }
  0x31   :  { %975 = vsyncadd [#allocation3], 4294967264 }
  0x32   :  { %976 = dma.done.wait [#allocation6], 288  }
  0x33   :  { %977 = vsyncadd [#allocation6], 4294967008 }
  0x34   :  { %978 = dma.done.wait [#allocation9], 2048  }
  0x35   :  { %979 = vsyncadd [#allocation9], 4294965248 }
  0x36   :  { %980 = dma.done.wait [#allocation12], 2304  }
  0x37   :  { %981 = vsyncadd [#allocation12], 4294964992 }
  0x38   :  { %982 = dma.done.wait [#allocation15], 2048  }
  0x39   :  { %983 = vsyncadd [#allocation15], 4294965248 }
  0x3a   :  { %984 = dma.done.wait [#allocation18], 1040  }
  0x3b   :  { %985 = vsyncadd [#allocation18], 4294966256  ;;  %v230_v0 = vld [vmem:[#allocation7 + $0x8] sm:$0xff]  ;;  %v229_v1 = vld [vmem:[#allocation7] sm:$0xff]  ;;  %vm235_vm0 = vcmask 130048   ;;  %s1254_s0 = sld [smem:[#allocation31_spill]] }
  0x3c   :  { %253 = vmatpush.msra.mxu1 %v230_v0  ;;  %v228_v2 = vld [vmem:[#allocation2] sm:$0x3]  ;;  %v269_v3 = vld [vmem:[#allocation8 + $0x38] sm:$0xff]  ;;  %v268_v4 = vld [vmem:[#allocation8 + $0x30] sm:$0xff]  ;;  %vm274_vm2 = vcmask 523264   ;;  %s1003_s3 = smov 32  }
  0x3d   :  { %v267_v5 = vld [vmem:[#allocation8 + $0x28] sm:$0xff]  ;;  %v266_v6 = vld [vmem:[#allocation8 + $0x20] sm:$0xff]  ;;  %v265_v7 = vld [vmem:[#allocation8 + $0x18] sm:$0xff]  ;;  %s1004_s30 = smov 96   ;;  %s1005_s21 = smov 64   ;;  %vm551_vm7 = vcmask 254976  }
  0x3e   :  { %254 = vmatpush.msra.mxu1 %v229_v1  ;;  %v264_v8 = vld [vmem:[#allocation8 + $0x10] sm:$0xff]  ;;  %v263_v9 = vld [vmem:[#allocation8 + $0x8] sm:$0xff]  ;;  %v262_v10 = vld [vmem:[#allocation8] sm:$0xff]  ;;  %s632_s10 = sshll.u32 %s1246_s19, 4  ;;  %s1007_s2 = smov 2   ;;  %s633_s10 = int_to_ptr.hbm [resolvable:$true] %s632_s10 }
  0x3f   :  { %650 = vmatmul.msk.f32.vlgmr.msra.gmra.mxu1 %vm235_vm0, %v228_v2  ;;  %v406_v11 = vld [vmem:[#allocation13 + $0x8] sm:$0xff]  ;;  %v405_v12 = vld [vmem:[#allocation13] sm:$0xff]  ;;  %v308_v13 = vld [vmem:[#allocation10 + $0x38] sm:$0xff] }
  0x40   :  { %286 = vmatpush.msrb.mxu1 %v269_v3  ;;  %v307_v14 = vld [vmem:[#allocation10 + $0x30] sm:$0xff]  ;;  %324 = vmatpush.msra.mxu2 %v308_v13  ;;  %v306_v15 = vld [vmem:[#allocation10 + $0x28] sm:$0xff]  ;;  %v305_v16 = vld [vmem:[#allocation10 + $0x20] sm:$0xff] }
  0x41   :  { %v304_v17 = vld [vmem:[#allocation10 + $0x18] sm:$0xff]  ;;  %v303_v18 = vld [vmem:[#allocation10 + $0x10] sm:$0xff]  ;;  %v302_v19 = vld [vmem:[#allocation10 + $0x8] sm:$0xff] }
  0x42   :  { %287 = vmatpush.msrb.mxu1 %v268_v4  ;;  %325 = vmatpush.msra.mxu2 %v307_v14  ;;  %v301_v20 = vld [vmem:[#allocation10] sm:$0xff]  ;;  %v444_v21 = vld [vmem:[#allocation14 + $0x38] sm:$0xff]  ;;  %v442_v29 = vld [vmem:[#allocation14 + $0x28] sm:$0xff] }
  0x43   :  { %v679_v22 = vld [vmem:[%s1254_s0] ss:$0 sm:$0xff]  ;;  %v404_v27 = vld [vmem:[#allocation5] sm:$0x3]  ;;  %v443_v28 = vld [vmem:[#allocation14 + $0x30] sm:$0xff] }
  0x44   :  { %288 = vmatpush.msrb.mxu1 %v267_v5  ;;  %326 = vmatpush.msra.mxu2 %v306_v15  ;;  %v441_v30 = vld [vmem:[#allocation14 + $0x20] sm:$0xff]  ;;  %v440_v31 = vld [vmem:[#allocation14 + $0x18] sm:$0xff]  ;;  %v439_v32 = vld [vmem:[#allocation14 + $0x10] sm:$0xff] }
  0x45   :  { %v438_v33 = vld [vmem:[#allocation14 + $0x8] sm:$0xff]  ;;  %v437_v34 = vld [vmem:[#allocation14] sm:$0xff]  ;;  %v351_v36 = vld [vmem:[#allocation11 + $0x60] sm:$0xff] }
  0x46   :  { %289 = vmatpush.msrb.mxu1 %v266_v6  ;;  %327 = vmatpush.msra.mxu2 %v305_v16  ;;  %v353_v35 = vld [vmem:[#allocation11 + $0x70] sm:$0xff]  ;;  %v354_v37 = vld [vmem:[#allocation11 + $0x78] sm:$0xff]  ;;  %v352_v39 = vld [vmem:[#allocation11 + $0x68] sm:$0xff] }
  0x47   :  { %372 = vmatpush.msra.mxu3 %v353_v35  ;;  %v349_v38 = vld [vmem:[#allocation11 + $0x50] sm:$0xff]  ;;  %392 = vmatpush.msra.mxu0 %v354_v37  ;;  %v350_v40 = vld [vmem:[#allocation11 + $0x58] sm:$0xff]  ;;  %v347_v41 = vld [vmem:[#allocation11 + $0x40] sm:$0xff] }
  0x48   :  { %290 = vmatpush.msrb.mxu1 %v265_v7  ;;  %328 = vmatpush.msra.mxu2 %v304_v17  ;;  %v348_v42 = vld [vmem:[#allocation11 + $0x48] sm:$0xff]  ;;  %v345_v43 = vld [vmem:[#allocation11 + $0x30] sm:$0xff]  ;;  %v346_v44 = vld [vmem:[#allocation11 + $0x38] sm:$0xff] }
  0x49   :  { %373 = vmatpush.msra.mxu3 %v351_v36  ;;  %393 = vmatpush.msra.mxu0 %v352_v39  ;;  %v343_v45 = vld [vmem:[#allocation11 + $0x20] sm:$0xff]  ;;  %v341_v46 = vld [vmem:[#allocation11 + $0x10] sm:$0xff]  ;;  %v482_v48 = vld [vmem:[#allocation16 + $0x38] sm:$0xff] }
  0x4a   :  { %291 = vmatpush.msrb.mxu1 %v264_v8  ;;  %329 = vmatpush.msra.mxu2 %v303_v18  ;;  %v339_v47 = vld [vmem:[#allocation11] sm:$0xff]  ;;  %v680_v49 = vld [vmem:[%s1232_s5] ss:$0 sm:$0xff]  ;;  %v342_v61 = vld [vmem:[#allocation11 + $0x18] sm:$0xff] }
  0x4b   :  { %374 = vmatpush.msra.mxu3 %v349_v38  ;;  %394 = vmatpush.msra.mxu0 %v350_v40  ;;  %v681_v54 = vld [vmem:[%s1238_s11] ss:$0 sm:$0xff]  ;;  %v481_v60 = vld [vmem:[#allocation16 + $0x30] sm:$0xff]  ;;  %v480_v62 = vld [vmem:[#allocation16 + $0x28] sm:$0xff] }
  0x4c   :  { %292 = vmatpush.msrb.mxu1 %v263_v9  ;;  %330 = vmatpush.msra.mxu2 %v302_v19  ;;  %v344_v59 = vld [vmem:[#allocation11 + $0x28] sm:$0xff]  ;;  %v479_v0 = vld [vmem:[#allocation16 + $0x20] sm:$0xff]  ;;  %v477_v2 = vld [vmem:[#allocation16 + $0x10] sm:$0xff] }
  0x4d   :  { %375 = vmatpush.msra.mxu3 %v347_v41  ;;  %395 = vmatpush.msra.mxu0 %v348_v42  ;;  %v340_v63 = vld [vmem:[#allocation11 + $0x8] sm:$0xff]  ;;  %v476_v3 = vld [vmem:[#allocation16 + $0x8] sm:$0xff]  ;;  %v475_v4 = vld [vmem:[#allocation16] sm:$0xff] }
  0x4e   :  { %293 = vmatpush.msrb.mxu1 %v262_v10  ;;  %331 = vmatpush.msra.mxu2 %v301_v20  ;;  %v478_v1 = vld [vmem:[#allocation16 + $0x18] sm:$0xff]  ;;  %v519_v20 = vld [vmem:[#allocation17 + $0x30] sm:$0xff] }
  0x4f   :  { %376 = vmatpush.msra.mxu3 %v345_v43  ;;  %396 = vmatpush.msra.mxu0 %v346_v44  ;;  %v1179_v5 = vld [vmem:[%s1245_s18] sm:$0x1f] }
  0x50   :  { %428 = vmatpush.msra.mxu1 %v406_v11  ;;  %460 = vmatpush.msrb.mxu2 %v444_v21  ;;  %v564_v6 = vperm.slane %v1179_v5, 1  ;;  %v600_v7 = vperm.slane %v1179_v5, 3  ;;  %v582_v8 = vperm.slane %v1179_v5, 2  ;;  %v682_v9 = vld [vmem:[%s1234_s7] ss:$0 sm:$0xff]  ;;  %v518_v21 = vld [vmem:[#allocation17 + $0x28] sm:$0xff] }
  0x51   :  { %377 = vmatpush.msra.mxu3 %v343_v45  ;;  %397 = vmatpush.msra.mxu0 %v344_v59  ;;  %v683_v14 = vld [vmem:[%s1240_s13] ss:$0 sm:$0xff] }
  0x52   :  { %429 = vmatpush.msra.mxu1 %v405_v12  ;;  %461 = vmatpush.msrb.mxu2 %v443_v28  ;;  %v520_v19 = vld [vmem:[#allocation17 + $0x38] sm:$0xff] }
  0x53   :  { %378 = vmatpush.msra.mxu3 %v341_v46  ;;  %398 = vmatpush.msra.mxu0 %v342_v61  ;;  %v355_v28 = vld [vmem:[%s1236_s9] sm:$0x3]  ;;  %s1006_s9 = smov [#allocation20]  }
  0x54   :  { %462 = vmatpush.msrb.mxu2 %v442_v29  ;;  %566 = vrot.lane.b32.xlu0 %v564_v6, %s1003_s3  ;;  %v357_v29 = vperm.slane %v355_v28, 0  ;;  %v684_v39 = vld [vmem:[%s1242_s15] ss:$0 sm:$0xff]  ;;  %s630_s15 = sshll.u32 %s1006_s9, 4  ;;  %s631_s15 = int_to_ptr.vmem [resolvable:$true] %s630_s15 }
  0x55   :  { %379 = vmatpush.msra.mxu3 %v339_v47  ;;  %399 = vmatpush.msra.mxu0 %v340_v63  ;;  %v617_v63 = vperm.slane %v1179_v5, 4 }
  0x56   :  { %463 = vmatpush.msrb.mxu2 %v441_v30  ;;  %602 = vrot.lane.b32.xlu1 %v600_v7, %s1004_s30 }
  0x57   :  { %498 = vmatpush.msrb.mxu3 %v482_v48  ;;  %536 = vmatpush.msrb.mxu0 %v520_v19 }
  0x58   :  { %464 = vmatpush.msrb.mxu2 %v440_v31 }
  0x59   :  { %499 = vmatpush.msrb.mxu3 %v481_v60  ;;  %537 = vmatpush.msrb.mxu0 %v519_v20 }
  0x5a   :  { %465 = vmatpush.msrb.mxu2 %v439_v32  ;;  %v553_v32 = vperm.slane %v1179_v5, 0 }
  0x5b   :  { %500 = vmatpush.msrb.mxu3 %v480_v62  ;;  %538 = vmatpush.msrb.mxu0 %v518_v21 }
  0x5c   :  { %466 = vmatpush.msrb.mxu2 %v438_v33  ;;  %584 = vrot.lane.b32.xlu0 %v582_v8, %s1005_s21  ;;  %v358_v33 = vperm.slane %v355_v28, 1 }
  0x5d   :  { %501 = vmatpush.msrb.mxu3 %v479_v0 }
  0x5e   :  { %467 = vmatpush.msrb.mxu2 %v437_v34 }
  0x5f   :  { %502 = vmatpush.msrb.mxu3 %v478_v1 }
  0x61   :  { %503 = vmatpush.msrb.mxu3 %v477_v2 }
  0x63   :  { %504 = vmatpush.msrb.mxu3 %v476_v3 }
  0x65   :  { %505 = vmatpush.msrb.mxu3 %v475_v4 }
  0xbc   :  { %v256_v23 = vpop.f32.mrf.mxu1 }
  0xbd   :  { %v257_v24 = vadd.f32 %v679_v22, %v256_v23  ;;  %v517_v22 = vld [vmem:[#allocation17 + $0x20] sm:$0xff]  ;;  %v516_v23 = vld [vmem:[#allocation17 + $0x18] sm:$0xff] }
  0xbe   :  { %539 = vmatpush.msrb.mxu0 %v517_v22 }
  0xbf   :  { %vm259_vm1 = vcmp.ge.f32.partialorder %v257_v24, 0.0  ;;  %v260_v25 = vmul.f32 0.2, %v257_v24 }
  0xc0   :  { %540 = vmatpush.msrb.mxu0 %v516_v23 }
  0xc1   :  { %v261_v26 = vsel %vm259_vm1, %v257_v24, %v260_v25  ;;  %v515_v24 = vld [vmem:[#allocation17 + $0x10] sm:$0xff]  ;;  %v514_v25 = vld [vmem:[#allocation17 + $0x8] sm:$0xff] }
  0xc2   :  { %651 = vmatmul.msk.f32.vlgmr.msrb.gmra.mxu1 %vm274_vm2, %v261_v26  ;;  %541 = vmatpush.msrb.mxu0 %v515_v24  ;;  %v513_v26 = vld [vmem:[#allocation17] sm:$0xff] }
  0xc4   :  { %542 = vmatpush.msrb.mxu0 %v514_v25 }
  0xc6   :  { %543 = vmatpush.msrb.mxu0 %v513_v26 }
  0xc8   :  { %v603_v38 = vpop.permute.xlu1 %602 }
  0xca   :  { %655 = vmatmul.msk.f32.vlgmr.msra.gmra.mxu1 %vm235_vm0, %v404_v27  ;;  %v567_v27 = vpop.permute.xlu0 %566 }
  0xd2   :  { %v585_v36 = vpop.permute.xlu0 %584 }
 0x13f   :  { %v295_v50 = vpop.f32.mrf.mxu1 }
 0x140   :  { %v296_v51 = vadd.f32 %v680_v49, %v295_v50 }
 0x142   :  { %v299_v52 = vmul.f32 0.2, %v296_v51  ;;  %vm298_vm3 = vcmp.ge.f32.partialorder %v296_v51, 0.0 }
 0x144   :  { %v300_v53 = vsel %vm298_vm3, %v296_v51, %v299_v52 }
 0x145   :  { %652 = vmatmul.msk.f32.vlgmr.msra.gmra.mxu2 %vm274_vm2, %v300_v53 }
 0x147   :  { %v431_v55 = vpop.f32.mrf.mxu1 }
 0x148   :  { %v432_v56 = vadd.f32 %v681_v54, %v431_v55 }
 0x14a   :  { %vm434_vm4 = vcmp.ge.f32.partialorder %v432_v56, 0.0  ;;  %v435_v57 = vmul.f32 0.2, %v432_v56 }
 0x14c   :  { %v436_v58 = vsel %vm434_vm4, %v432_v56, %v435_v57 }
 0x14d   :  { %656 = vmatmul.msk.f32.vlgmr.msrb.gmra.mxu2 %vm274_vm2, %v436_v58  ;;  %v685_v58 = vld [vmem:[#allocation19] ss:$0 sm:$0xff] }
 0x1c8   :  { %v333_v10 = vpop.f32.mrf.mxu2 }
 0x1c9   :  { %v334_v11 = vadd.f32 %v682_v9, %v333_v10 }
 0x1cb   :  { %v337_v12 = vmul.f32 0.2, %v334_v11  ;;  %vm336_vm5 = vcmp.ge.f32.partialorder %v334_v11, 0.0 }
 0x1cd   :  { %v338_v13 = vsel %vm336_vm5, %v334_v11, %v337_v12 }
 0x1ce   :  { %653 = vmatmul.msk.f32.vlgmr.msra.gmra.mxu3 %vm274_vm2, %v338_v13  ;;  %654 = vmatmul.msk.f32.vlgmr.msra.gmra.mxu0 %vm274_vm2, %v338_v13 }
 0x1d0   :  { %v469_v15 = vpop.f32.mrf.mxu2 }
 0x1d1   :  { %v470_v16 = vadd.f32 %v683_v14, %v469_v15 }
 0x1d3   :  { %vm472_vm6 = vcmp.ge.f32.partialorder %v470_v16, 0.0  ;;  %v473_v17 = vmul.f32 0.2, %v470_v16 }
 0x1d5   :  { %v474_v18 = vsel %vm472_vm6, %v470_v16, %v473_v17 }
 0x1d6   :  { %657 = vmatmul.msk.f32.vlgmr.msrb.gmra.mxu3 %vm274_vm2, %v474_v18 }
 0x24b   :  { %v401_v35 = vpop.f32.mrf.mxu0 }
 0x24c   :  { %v402_v40 = vadd.f32 %v401_v35, %v358_v33 }
 0x251   :  { %v381_v30 = vpop.f32.mrf.mxu3 }
 0x252   :  { %v382_v31 = vadd.f32 %v381_v30, %v357_v29 }
 0x254   :  { %v549_v34 = vmul.f32 15.0, %v382_v31 }
 0x256   :  { %v550_v37 = vadd.f32 30.0, %v549_v34 }
 0x258   :  { %v554_v41 = vmul.f32 %v553_v32, %v550_v37  ;;  %v587_v42 = vmul.f32 %v585_v36, %v550_v37  ;;  %577 = vrot.lane.b32.xlu0 %v550_v37, %s1005_s21  ;;  %559 = vrot.lane.b32.xlu2 %v550_v37, %s1004_s30  ;;  %552 = vst.msk [vmem:[#allocation20] sm:$0x3] %vm551_vm7, %v550_v37 }
 0x259   :  { %v605_v43 = vmul.f32 %v603_v38, %v550_v37  ;;  %v507_v44 = vpop.f32.mrf.mxu3  ;;  %v569_v48 = vmul.f32 %v567_v27, %v550_v37 }
 0x25a   :  { %v555_v45 = vadd.f32 %v554_v41, %v402_v40  ;;  %v588_v46 = vadd.f32 %v587_v42, %v402_v40  ;;  %v508_v47 = vadd.f32 %v684_v39, %v507_v44 }
 0x25b   :  { %v606_v50 = vadd.f32 %v605_v43, %v402_v40  ;;  %v570_v52 = vadd.f32 %v569_v48, %v402_v40 }
 0x25c   :  { %vm510_vm8 = vcmp.ge.f32.partialorder %v508_v47, 0.0  ;;  %v511_v49 = vmul.f32 0.2, %v508_v47  ;;  %557 = vst.msk [vmem:[#allocation20 + $0x2] sm:$0x3] %vm551_vm7, %v555_v45 }
 0x25e   :  { %v512_v51 = vsel %vm510_vm8, %v508_v47, %v511_v49 }
 0x25f   :  { %658 = vmatmul.msk.f32.vlgmr.msrb.gmra.mxu0 %vm274_vm2, %v512_v51 }
 0x260   :  { %608 = vrot.lane.b32.xlu0 %v606_v50, %s1003_s3  ;;  %572 = vrot.lane.b32.xlu2 %v570_v52, %s1004_s30 }
 0x268   :  { %595 = vrot.lane.b32.xlu2 %v550_v37, %s1003_s3 }
 0x2b2   :  { %v560_v53 = vpop.permute.xlu2 %559 }
 0x2b3   :  { %563 = vst.msk [vmem:[#allocation20 + $0x4] sm:$0x3] %vm551_vm7, %v560_v53 }
 0x2ba   :  { %v573_v54 = vpop.permute.xlu2 %572 }
 0x2bb   :  { %576 = vst.msk [vmem:[#allocation20 + $0x6] sm:$0x3] %vm551_vm7, %v573_v54 }
 0x2c2   :  { %v596_v55 = vpop.permute.xlu2 %595 }
 0x2c3   :  { %599 = vst.msk [vmem:[#allocation20 + $0xc] sm:$0x3] %vm551_vm7, %v596_v55 }
 0x2ca   :  { %v578_v56 = vpop.permute.xlu0 %577 }
 0x2cb   :  { %581 = vst.msk [vmem:[#allocation20 + $0x8] sm:$0x3] %vm551_vm7, %v578_v56 }
 0x2d2   :  { %v609_v57 = vpop.permute.xlu0 %608 }
 0x2d3   :  { %612 = vst.msk [vmem:[#allocation20 + $0xe] sm:$0x3] %vm551_vm7, %v609_v57 }
 0x2dc   :  { %v545_v59 = vpop.f32.mrf.mxu0 }
 0x2dd   :  { %v546_v60 = vadd.f32 %v685_v58, %v545_v59 }
 0x2df   :  { %v613_v61 = vmul.f32 15.0, %v546_v60  ;;  %620 = vrot.lane.b32.xlu1 %v546_v60, %s1004_s30 }
 0x2e1   :  { %v614_v62 = vadd.f32 30.0, %v613_v61 }
 0x2e3   :  { %616 = vst.msk [vmem:[#allocation20 + $0x10] sm:$0x3] %vm551_vm7, %v614_v62  ;;  %v618_v0 = vmul.f32 %v617_v63, %v614_v62 }
 0x2e7   :  { %590 = vrot.lane.b32.xlu1 %v588_v46, %s1005_s21 }
 0x351   :  { %v621_v1 = vpop.permute.xlu1 %620 }
 0x352   :  { %v623_v2 = vadd.f32 %v621_v1, %v618_v0 }
 0x354   :  { %625 = vst.msk [vmem:[#allocation20 + $0x12] sm:$0x3] %vm551_vm7, %v623_v2 }
 0x359   :  { %v591_v3 = vpop.permute.xlu1 %590 }
 0x35a   :  { %594 = vst.msk [vmem:[#allocation20 + $0xa] sm:$0x3] %vm551_vm7, %v591_v3 }
 0x35b   :  { %638 = dma.vmem_to_hbm [thread:$0]  %s631_s15, 320, %s633_s10, [#allocation4], %s1003_s3, %s1003_s3, %s1007_s2  }
 0x35c   :  { %986 = dma.done.wait [#allocation4], 320  }
 0x35d   :  { %987 = vsyncadd [#allocation4], 4294966976 }
 0x35e   :  { %643 = vsyncpa [#allocation3], 1 }
 0x35f   :  { %644 = vsyncpa [#allocation6], 1 }
 0x360   :  { %645 = vsyncpa [#allocation9], 1 }
 0x361   :  { %646 = vsyncpa [#allocation12], 1 }
 0x362   :  { %647 = vsyncpa [#allocation15], 1 }
 0x363   :  { %648 = vsyncpa [#allocation18], 1 }
 0x364   :  { %649 = vsyncpa [#allocation4], 1 }

</bundles_post_ra>
